<compile_context>
chip_gen: v7x
topology: tpu7x:2x2x1
jax: 0.10.0
libtpu: 0.0.40
codegen_flags: <defaults>
</compile_context>

<pallas_src>
import functools

import jax
import jax.numpy as jnp
from jax import lax
from jax.experimental import pallas as pl
from jax.experimental.pallas import tpu as pltpu

LN_EPS = 1e-5  # PyTorch nn.LayerNorm default

# Set to jnp.bfloat16 for bf16 MXU operands (recommended on v5e; ~1e-2 rel. error).
MATMUL_DTYPE = jnp.float32


def _mm(v):
    """Cast a matmul operand to the MXU input dtype (no-op for float32)."""
    return v if MATMUL_DTYPE == jnp.float32 else v.astype(MATMUL_DTYPE)


def _layer_norm(y, gamma, beta):
    mu = jnp.mean(y, axis=-1, keepdims=True)
    var = jnp.mean(jnp.square(y - mu), axis=-1, keepdims=True)
    return (y - mu) * lax.rsqrt(var + LN_EPS) * gamma + beta


# ----------------------------------------------------------------------------
# Single fused kernel: QKV -> per-(b,h) SDPA -> out-proj -> LN1 -> mask -> FFN -> LN2 -> mask
# ----------------------------------------------------------------------------
def encoder_layer_kernel(x_ref, mask_ref,
                         wqkv_ref, bqkv_ref, wfc_ref, bfc_ref, g1_ref, be1_ref,
                         w1_ref, b1_ref, w2_ref, b2_ref, g2_ref, be2_ref,
                         o_ref, attn_ref,
                         qkv_s, ctx_s,
                         *, B, S, n_head, d_k, d_v, inv_temperature):
    x = x_ref[...].astype(jnp.float32)        # (B*S, d_model)
    mask = mask_ref[...]                      # (B*S, 1)

    # Fused QKV projection for all batches and heads: one (B*S, d_model) matmul.
    qkv_s[...] = (jnp.dot(_mm(x), _mm(wqkv_ref[...]),
                          preferred_element_type=jnp.float32) + bqkv_ref[...])

    q_off, k_off, v_off = 0, n_head * d_k, 2 * n_head * d_k

    # Per-(batch, head) attention: static loop; head/batch slices are static windows
    # of the VMEM scratch, so there is no HBM traffic between QKV and attention.
    for b in range(B):
        r0 = b * S
        for h in range(n_head):
            qh = qkv_s[r0:r0 + S, q_off + h * d_k: q_off + (h + 1) * d_k] * inv_temperature
            kh = qkv_s[r0:r0 + S, k_off + h * d_k: k_off + (h + 1) * d_k]
            vh = qkv_s[r0:r0 + S, v_off + h * d_v: v_off + (h + 1) * d_v]

            # q @ k^T without materializing a transpose: contract the last axes.
            s = lax.dot_general(_mm(qh), _mm(kh), (((1,), (1,)), ((), ())),
                                preferred_element_type=jnp.float32)    # (S, S)
            s = s - jnp.max(s, axis=-1, keepdims=True)                 # stable softmax
            p = jnp.exp(s)
            # approx reciprocal issues on the otherwise-idle EUP slot (~1e-4 rel err).
            p = p * pl.reciprocal(jnp.sum(p, axis=-1, keepdims=True), approx=True)

            attn_ref[h, b] = p.astype(attn_ref.dtype)
            ctx_s[r0:r0 + S, h * d_v:(h + 1) * d_v] = jnp.dot(
                _mm(p), _mm(vh), preferred_element_type=jnp.float32)

    # MHA epilogue: output projection -> +residual -> LayerNorm1 -> *non_pad_mask.
    y = (jnp.dot(_mm(ctx_s[...]), _mm(wfc_ref[...]),
                 preferred_element_type=jnp.float32) + bfc_ref[...])
    y = _layer_norm(y + x, g1_ref[...], be1_ref[...])
    y = y * mask                                                       # enc_output *= non_pad_mask

    # Position-wise FFN: w1 -> ReLU -> w2 -> +residual -> LayerNorm2 -> *non_pad_mask.
    h1 = jnp.maximum(jnp.dot(_mm(y), _mm(w1_ref[...]),
                             preferred_element_type=jnp.float32) + b1_ref[...], 0.0)
    z = (jnp.dot(_mm(h1), _mm(w2_ref[...]),
                 preferred_element_type=jnp.float32) + b2_ref[...])
    z = _layer_norm(z + y, g2_ref[...], be2_ref[...])
    o_ref[...] = (z * mask).astype(o_ref.dtype)


# ----------------------------------------------------------------------------
# Wrapper: single pallas_call, single grid step
# ----------------------------------------------------------------------------
def encoder_layer(params, enc_input, non_pad_mask, *, n_head, d_k, d_v):
    B, S, d_model = enc_input.shape
    rows = B * S
    d_qkv = params["w_qkv"].shape[1]       # n_head * (2*d_k + d_v)
    d_ctx = n_head * d_v
    d_inner = params["w1"].shape[1]

    x2 = enc_input.reshape(rows, d_model)   # contiguous reshape (free)
    m2 = non_pad_mask.reshape(rows, 1)

    kernel = functools.partial(
        encoder_layer_kernel, B=B, S=S, n_head=n_head, d_k=d_k, d_v=d_v,
        inv_temperature=1.0 / (float(d_k) ** 0.5))

    def rep(shape):
        # Full-array block, constant index (single grid step).
        return pl.BlockSpec(shape, lambda i, _n=len(shape): (0,) * _n)

    out, attn = pl.pallas_call(
        kernel,
        grid=(1,),
        in_specs=[
            rep((rows, d_model)),      # x (flattened activations)
            rep((rows, 1)),            # non_pad_mask
            rep((d_model, d_qkv)),     # fused QKV weight
            rep((1, d_qkv)),           # fused QKV bias
            rep((d_ctx, d_model)),     # out-proj weight
            rep((1, d_model)),         # out-proj bias
            rep((1, d_model)),         # LN1 gamma
            rep((1, d_model)),         # LN1 beta
            rep((d_model, d_inner)),   # FFN w1
            rep((1, d_inner)),         # FFN b1
            rep((d_inner, d_model)),   # FFN w2
            rep((1, d_model)),         # FFN b2
            rep((1, d_model)),         # LN2 gamma
            rep((1, d_model)),         # LN2 beta
        ],
        out_specs=[
            rep((rows, d_model)),
            rep((n_head, B, S, S)),
        ],
        out_shape=[
            jax.ShapeDtypeStruct((rows, d_model), enc_input.dtype),
            jax.ShapeDtypeStruct((n_head, B, S, S), jnp.float32),
        ],
        scratch_shapes=[
            pltpu.VMEM((rows, d_qkv), jnp.float32),   # fused QKV activations
            pltpu.VMEM((rows, d_ctx), jnp.float32),   # concat-heads context
        ],
        compiler_params=pltpu.CompilerParams(dimension_semantics=("arbitrary",)),
    )(x2, m2, params["w_qkv"], params["b_qkv"], params["w_fc"], params["b_fc"],
      params["ln1_g"], params["ln1_b"], params["w1"], params["b1"],
      params["w2"], params["b2"], params["ln2_g"], params["ln2_b"])

    enc_output = out.reshape(B, S, d_model)
    # (H, B, S, S) -> (H*B, S, S): contiguous reshape, matches torch's head-major view.
    enc_slf_attn = attn.reshape(n_head * B, S, S)
    return enc_output, enc_slf_attn


# ----------------------------------------------------------------------------
# Parameters: raw init mirrors nn.Module shapes; prepare_params fuses QKV once
# (hoisted out of the jitted forward) and pre-shapes 1-D params to (1, d).
# ----------------------------------------------------------------------------
def init_params(key, d_model, d_inner, n_head, d_k, d_v):
    ks = jax.random.split(key, 10)
    n = lambda k, shape, scale: scale * jax.random.normal(k, shape, jnp.float32)
    return {
        "w_qs": n(ks[0], (d_model, n_head * d_k), (2.0 / (d_model + d_k)) ** 0.5),
        "b_qs": n(ks[1], (n_head * d_k,), 0.02),
        "w_ks": n(ks[2], (d_model, n_head * d_k), (2.0 / (d_model + d_k)) ** 0.5),
        "b_ks": n(ks[3], (n_head * d_k,), 0.02),
        "w_vs": n(ks[4], (d_model, n_head * d_v), (2.0 / (d_model + d_v)) ** 0.5),
        "b_vs": n(ks[5], (n_head * d_v,), 0.02),
        "w_fc": n(ks[6], (n_head * d_v, d_model), (2.0 / (n_head * d_v + d_model)) ** 0.5),
        "b_fc": n(ks[7], (d_model,), 0.02),
        "ln1_g": jnp.ones((d_model,), jnp.float32),
        "ln1_b": jnp.zeros((d_model,), jnp.float32),
        "w1": n(ks[8], (d_model, d_inner), (2.0 / (d_model + d_inner)) ** 0.5),
        "b1": jnp.zeros((d_inner,), jnp.float32),
        "w2": n(ks[9], (d_inner, d_model), (2.0 / (d_model + d_inner)) ** 0.5),
        "b2": jnp.zeros((d_model,), jnp.float32),
        "ln2_g": jnp.ones((d_model,), jnp.float32),
        "ln2_b": jnp.zeros((d_model,), jnp.float32),
    }


def prepare_params(raw):
    """One-time (outside jit) weight fusion/reshape so the forward does no HBM concat."""
    row = lambda a: a.reshape(1, -1)
    return {
        "w_qkv": jnp.concatenate([raw["w_qs"], raw["w_ks"], raw["w_vs"]], axis=1),
        "b_qkv": row(jnp.concatenate([raw["b_qs"], raw["b_ks"], raw["b_vs"]], axis=0)),
        "w_fc": raw["w_fc"], "b_fc": row(raw["b_fc"]),
        "ln1_g": row(raw["ln1_g"]), "ln1_b": row(raw["ln1_b"]),
        "w1": raw["w1"], "b1": row(raw["b1"]),
        "w2": raw["w2"], "b2": row(raw["b2"]),
        "ln2_g": row(raw["ln2_g"]), "ln2_b": row(raw["ln2_b"]),
    }


if __name__ == "__main__":
    B, S = 2, 8
    d_model, d_inner, n_head, d_k, d_v = 32, 64, 2, 16, 16

    key = jax.random.PRNGKey(0)
    k_param, k_in = jax.random.split(key)

    params = prepare_params(init_params(k_param, d_model, d_inner, n_head, d_k, d_v))
    enc_input = jax.random.normal(k_in, (B, S, d_model), jnp.float32)

    # non_pad_mask: (B, S, 1) float mask; second example padded after position 5.
    lengths = jnp.array([S, 5])
    non_pad_mask = (jnp.arange(S)[None, :] < lengths[:, None]).astype(jnp.float32)[..., None]

    fwd = jax.jit(functools.partial(encoder_layer, n_head=n_head, d_k=d_k, d_v=d_v))
    enc_output, enc_slf_attn = fwd(params, enc_input, non_pad_mask)
    jax.block_until_ready((enc_output, enc_slf_attn))

    assert enc_output.shape == (B, S, d_model)
    assert enc_slf_attn.shape == (n_head * B, S, S)
    print("KERNEL_OK")
</pallas_src>

<mosaic_0001>
module attributes {stable_mosaic.version = 11 : i64} {
  func.func @encoder_layer_kernel(%arg0: i32, %arg1: memref<16x32xf32, #tpu.memory_space<vmem>>, %arg2: memref<16x1xf32, #tpu.memory_space<vmem>>, %arg3: memref<32x96xf32, #tpu.memory_space<vmem>>, %arg4: memref<1x96xf32, #tpu.memory_space<vmem>>, %arg5: memref<32x32xf32, #tpu.memory_space<vmem>>, %arg6: memref<1x32xf32, #tpu.memory_space<vmem>>, %arg7: memref<1x32xf32, #tpu.memory_space<vmem>>, %arg8: memref<1x32xf32, #tpu.memory_space<vmem>>, %arg9: memref<32x64xf32, #tpu.memory_space<vmem>>, %arg10: memref<1x64xf32, #tpu.memory_space<vmem>>, %arg11: memref<64x32xf32, #tpu.memory_space<vmem>>, %arg12: memref<1x32xf32, #tpu.memory_space<vmem>>, %arg13: memref<1x32xf32, #tpu.memory_space<vmem>>, %arg14: memref<1x32xf32, #tpu.memory_space<vmem>>, %arg15: memref<16x32xf32, #tpu.memory_space<vmem>>, %arg16: memref<2x2x8x8xf32, #tpu.memory_space<vmem>>, %arg17: memref<16x96xf32, #tpu.memory_space<vmem>>, %arg18: memref<16x32xf32, #tpu.memory_space<vmem>>) attributes {dimension_semantics = [#tpu.dimension_semantics<arbitrary>], iteration_bounds = array<i64: 1>, scalar_prefetch = 0 : i64, scratch_operands = 2 : i64, tpu.core_type = #tpu.core_type<tc>, window_params = [{pipeline_mode = #tpu.pipeline_mode<synchronous>, transform_indices = @transform_0, window_bounds = array<i64: 16, 32>}, {pipeline_mode = #tpu.pipeline_mode<synchronous>, transform_indices = @transform_1, window_bounds = array<i64: 16, 1>}, {pipeline_mode = #tpu.pipeline_mode<synchronous>, transform_indices = @transform_2, window_bounds = array<i64: 32, 96>}, {pipeline_mode = #tpu.pipeline_mode<synchronous>, transform_indices = @transform_3, window_bounds = array<i64: 1, 96>}, {pipeline_mode = #tpu.pipeline_mode<synchronous>, transform_indices = @transform_4, window_bounds = array<i64: 32, 32>}, {pipeline_mode = #tpu.pipeline_mode<synchronous>, transform_indices = @transform_5, window_bounds = array<i64: 1, 32>}, {pipeline_mode = #tpu.pipeline_mode<synchronous>, transform_indices = @transform_6, window_bounds = array<i64: 1, 32>}, {pipeline_mode = #tpu.pipeline_mode<synchronous>, transform_indices = @transform_7, window_bounds = array<i64: 1, 32>}, {pipeline_mode = #tpu.pipeline_mode<synchronous>, transform_indices = @transform_8, window_bounds = array<i64: 32, 64>}, {pipeline_mode = #tpu.pipeline_mode<synchronous>, transform_indices = @transform_9, window_bounds = array<i64: 1, 64>}, {pipeline_mode = #tpu.pipeline_mode<synchronous>, transform_indices = @transform_10, window_bounds = array<i64: 64, 32>}, {pipeline_mode = #tpu.pipeline_mode<synchronous>, transform_indices = @transform_11, window_bounds = array<i64: 1, 32>}, {pipeline_mode = #tpu.pipeline_mode<synchronous>, transform_indices = @transform_12, window_bounds = array<i64: 1, 32>}, {pipeline_mode = #tpu.pipeline_mode<synchronous>, transform_indices = @transform_13, window_bounds = array<i64: 1, 32>}, {pipeline_mode = #tpu.pipeline_mode<synchronous>, transform_indices = @transform_14, window_bounds = array<i64: 16, 32>}, {pipeline_mode = #tpu.pipeline_mode<synchronous>, transform_indices = @transform_15, window_bounds = array<i64: 2, 2, 8, 8>}]} {
    %c0 = arith.constant 0 : index
    %c0_0 = arith.constant 0 : index
    %0 = vector.load %arg1[%c0, %c0_0] : memref<16x32xf32, #tpu.memory_space<vmem>>, vector<16x32xf32>
    %c0_1 = arith.constant 0 : index
    %c0_2 = arith.constant 0 : index
    %1 = vector.load %arg2[%c0_1, %c0_2] : memref<16x1xf32, #tpu.memory_space<vmem>>, vector<16x1xf32>
    %c0_3 = arith.constant 0 : index
    %c0_4 = arith.constant 0 : index
    %2 = vector.load %arg3[%c0_3, %c0_4] : memref<32x96xf32, #tpu.memory_space<vmem>>, vector<32x96xf32>
    %cst = arith.constant dense<0.000000e+00> : vector<16x96xf32>
    %3 = tpu.matmul %0, %2, %cst {dimension_numbers = #tpu.dot_dimension_numbers<[1], [0], [0], [1], [0, 0, 1, 1], [], []>} : vector<16x32xf32>, vector<32x96xf32>, vector<16x96xf32> -> vector<16x96xf32>
    %c0_5 = arith.constant 0 : index
    %c0_6 = arith.constant 0 : index
    %4 = vector.load %arg4[%c0_5, %c0_6] : memref<1x96xf32, #tpu.memory_space<vmem>>, vector<1x96xf32>
    %5 = vector.broadcast %4 : vector<1x96xf32> to vector<16x96xf32>
    %6 = arith.addf %3, %5 : vector<16x96xf32>
    %c0_7 = arith.constant 0 : index
    %c0_8 = arith.constant 0 : index
    %7 = vector.load %arg17[%c0_7, %c0_8] : memref<16x96xf32, #tpu.memory_space<vmem>>, vector<16x96xf32>
    tpu.vector_store %arg17[%c0_7, %c0_8], %6 {strides = array<i32>} : memref<16x96xf32, #tpu.memory_space<vmem>>, vector<16x96xf32>,
    %c0_9 = arith.constant 0 : index
    %c0_10 = arith.constant 0 : index
    %8 = vector.load %arg17[%c0_9, %c0_10] : memref<16x96xf32, #tpu.memory_space<vmem>>, vector<8x16xf32>
    %cst_11 = arith.constant 2.500000e-01 : f32
    %9 = vector.broadcast %cst_11 : f32 to vector<8x16xf32>
    %10 = arith.mulf %8, %9 : vector<8x16xf32>
    %c0_12 = arith.constant 0 : index
    %c32 = arith.constant 32 : index
    %11 = vector.load %arg17[%c0_12, %c32] : memref<16x96xf32, #tpu.memory_space<vmem>>, vector<8x16xf32>
    %c0_13 = arith.constant 0 : index
    %c64 = arith.constant 64 : index
    %12 = vector.load %arg17[%c0_13, %c64] : memref<16x96xf32, #tpu.memory_space<vmem>>, vector<8x16xf32>
    %cst_14 = arith.constant dense<0.000000e+00> : vector<8x8xf32>
    %13 = tpu.matmul %10, %11, %cst_14 {dimension_numbers = #tpu.dot_dimension_numbers<[1], [1], [0], [0], [0, 0, 1, 0], [], []>} : vector<8x16xf32>, vector<8x16xf32>, vector<8x8xf32> -> vector<8x8xf32>
    %cst_15 = arith.constant dense<0xFF800000> : vector<8xf32>
    %14 = vector.multi_reduction <maximumf>, %13, %cst_15 [1] : vector<8x8xf32> to vector<8xf32>
    %15 = vector.shape_cast %14 : vector<8xf32> to vector<8x1xf32>
    %16 = vector.broadcast %15 : vector<8x1xf32> to vector<8x8xf32>
    %17 = arith.subf %13, %16 : vector<8x8xf32>
    %18 = math.exp %17 : vector<8x8xf32>
    %cst_16 = arith.constant dense<0.000000e+00> : vector<8xf32>
    %19 = vector.multi_reduction <add>, %18, %cst_16 [1] : vector<8x8xf32> to vector<8xf32>
    %20 = vector.shape_cast %19 : vector<8xf32> to vector<8x1xf32>
    %21 = tpu.reciprocal %20 {approx = true} : vector<8x1xf32> -> vector<8x1xf32>
    %22 = vector.broadcast %21 : vector<8x1xf32> to vector<8x8xf32>
    %23 = arith.mulf %18, %22 : vector<8x8xf32>
    %c0_17 = arith.constant 0 : index
    %c0_18 = arith.constant 0 : index
    %c0_19 = arith.constant 0 : index
    %c0_20 = arith.constant 0 : index
    %24 = vector.load %arg16[%c0_17, %c0_18, %c0_19, %c0_20] : memref<2x2x8x8xf32, #tpu.memory_space<vmem>>, vector<1x1x8x8xf32>
    %25 = vector.shape_cast %24 : vector<1x1x8x8xf32> to vector<8x8xf32>
    %26 = vector.shape_cast %23 : vector<8x8xf32> to vector<1x1x8x8xf32>
    tpu.vector_store %arg16[%c0_17, %c0_18, %c0_19, %c0_20], %26 {strides = array<i32>} : memref<2x2x8x8xf32, #tpu.memory_space<vmem>>, vector<1x1x8x8xf32>,
    %cst_21 = arith.constant dense<0.000000e+00> : vector<8x16xf32>
    %27 = tpu.matmul %23, %12, %cst_21 {dimension_numbers = #tpu.dot_dimension_numbers<[1], [0], [0], [1], [0, 0, 1, 1], [], []>} : vector<8x8xf32>, vector<8x16xf32>, vector<8x16xf32> -> vector<8x16xf32>
    %c0_22 = arith.constant 0 : index
    %c0_23 = arith.constant 0 : index
    %28 = vector.load %arg18[%c0_22, %c0_23] : memref<16x32xf32, #tpu.memory_space<vmem>>, vector<8x16xf32>
    tpu.vector_store %arg18[%c0_22, %c0_23], %27 {strides = array<i32>} : memref<16x32xf32, #tpu.memory_space<vmem>>, vector<8x16xf32>,
    %c0_24 = arith.constant 0 : index
    %c16 = arith.constant 16 : index
    %29 = vector.load %arg17[%c0_24, %c16] : memref<16x96xf32, #tpu.memory_space<vmem>>, vector<8x16xf32>
    %cst_25 = arith.constant 2.500000e-01 : f32
    %30 = vector.broadcast %cst_25 : f32 to vector<8x16xf32>
    %31 = arith.mulf %29, %30 : vector<8x16xf32>
    %c0_26 = arith.constant 0 : index
    %c48 = arith.constant 48 : index
    %32 = vector.load %arg17[%c0_26, %c48] : memref<16x96xf32, #tpu.memory_space<vmem>>, vector<8x16xf32>
    %c0_27 = arith.constant 0 : index
    %c80 = arith.constant 80 : index
    %33 = vector.load %arg17[%c0_27, %c80] : memref<16x96xf32, #tpu.memory_space<vmem>>, vector<8x16xf32>
    %cst_28 = arith.constant dense<0.000000e+00> : vector<8x8xf32>
    %34 = tpu.matmul %31, %32, %cst_28 {dimension_numbers = #tpu.dot_dimension_numbers<[1], [1], [0], [0], [0, 0, 1, 0], [], []>} : vector<8x16xf32>, vector<8x16xf32>, vector<8x8xf32> -> vector<8x8xf32>
    %cst_29 = arith.constant dense<0xFF800000> : vector<8xf32>
    %35 = vector.multi_reduction <maximumf>, %34, %cst_29 [1] : vector<8x8xf32> to vector<8xf32>
    %36 = vector.shape_cast %35 : vector<8xf32> to vector<8x1xf32>
    %37 = vector.broadcast %36 : vector<8x1xf32> to vector<8x8xf32>
    %38 = arith.subf %34, %37 : vector<8x8xf32>
    %39 = math.exp %38 : vector<8x8xf32>
    %cst_30 = arith.constant dense<0.000000e+00> : vector<8xf32>
    %40 = vector.multi_reduction <add>, %39, %cst_30 [1] : vector<8x8xf32> to vector<8xf32>
    %41 = vector.shape_cast %40 : vector<8xf32> to vector<8x1xf32>
    %42 = tpu.reciprocal %41 {approx = true} : vector<8x1xf32> -> vector<8x1xf32>
    %43 = vector.broadcast %42 : vector<8x1xf32> to vector<8x8xf32>
    %44 = arith.mulf %39, %43 : vector<8x8xf32>
    %c1 = arith.constant 1 : index
    %c0_31 = arith.constant 0 : index
    %c0_32 = arith.constant 0 : index
    %c0_33 = arith.constant 0 : index
    %45 = vector.load %arg16[%c1, %c0_31, %c0_32, %c0_33] : memref<2x2x8x8xf32, #tpu.memory_space<vmem>>, vector<1x1x8x8xf32>
    %46 = vector.shape_cast %45 : vector<1x1x8x8xf32> to vector<8x8xf32>
    %47 = vector.shape_cast %44 : vector<8x8xf32> to vector<1x1x8x8xf32>
    tpu.vector_store %arg16[%c1, %c0_31, %c0_32, %c0_33], %47 {strides = array<i32>} : memref<2x2x8x8xf32, #tpu.memory_space<vmem>>, vector<1x1x8x8xf32>,
    %cst_34 = arith.constant dense<0.000000e+00> : vector<8x16xf32>
    %48 = tpu.matmul %44, %33, %cst_34 {dimension_numbers = #tpu.dot_dimension_numbers<[1], [0], [0], [1], [0, 0, 1, 1], [], []>} : vector<8x8xf32>, vector<8x16xf32>, vector<8x16xf32> -> vector<8x16xf32>
    %c0_35 = arith.constant 0 : index
    %c16_36 = arith.constant 16 : index
    %49 = vector.load %arg18[%c0_35, %c16_36] : memref<16x32xf32, #tpu.memory_space<vmem>>, vector<8x16xf32>
    tpu.vector_store %arg18[%c0_35, %c16_36], %48 {strides = array<i32>} : memref<16x32xf32, #tpu.memory_space<vmem>>, vector<8x16xf32>,
    %c8 = arith.constant 8 : index
    %c0_37 = arith.constant 0 : index
    %50 = vector.load %arg17[%c8, %c0_37] : memref<16x96xf32, #tpu.memory_space<vmem>>, vector<8x16xf32>
    %cst_38 = arith.constant 2.500000e-01 : f32
    %51 = vector.broadcast %cst_38 : f32 to vector<8x16xf32>
    %52 = arith.mulf %50, %51 : vector<8x16xf32>
    %c8_39 = arith.constant 8 : index
    %c32_40 = arith.constant 32 : index
    %53 = vector.load %arg17[%c8_39, %c32_40] : memref<16x96xf32, #tpu.memory_space<vmem>>, vector<8x16xf32>
    %c8_41 = arith.constant 8 : index
    %c64_42 = arith.constant 64 : index
    %54 = vector.load %arg17[%c8_41, %c64_42] : memref<16x96xf32, #tpu.memory_space<vmem>>, vector<8x16xf32>
    %cst_43 = arith.constant dense<0.000000e+00> : vector<8x8xf32>
    %55 = tpu.matmul %52, %53, %cst_43 {dimension_numbers = #tpu.dot_dimension_numbers<[1], [1], [0], [0], [0, 0, 1, 0], [], []>} : vector<8x16xf32>, vector<8x16xf32>, vector<8x8xf32> -> vector<8x8xf32>
    %cst_44 = arith.constant dense<0xFF800000> : vector<8xf32>
    %56 = vector.multi_reduction <maximumf>, %55, %cst_44 [1] : vector<8x8xf32> to vector<8xf32>
    %57 = vector.shape_cast %56 : vector<8xf32> to vector<8x1xf32>
    %58 = vector.broadcast %57 : vector<8x1xf32> to vector<8x8xf32>
    %59 = arith.subf %55, %58 : vector<8x8xf32>
    %60 = math.exp %59 : vector<8x8xf32>
    %cst_45 = arith.constant dense<0.000000e+00> : vector<8xf32>
    %61 = vector.multi_reduction <add>, %60, %cst_45 [1] : vector<8x8xf32> to vector<8xf32>
    %62 = vector.shape_cast %61 : vector<8xf32> to vector<8x1xf32>
    %63 = tpu.reciprocal %62 {approx = true} : vector<8x1xf32> -> vector<8x1xf32>
    %64 = vector.broadcast %63 : vector<8x1xf32> to vector<8x8xf32>
    %65 = arith.mulf %60, %64 : vector<8x8xf32>
    %c0_46 = arith.constant 0 : index
    %c1_47 = arith.constant 1 : index
    %c0_48 = arith.constant 0 : index
    %c0_49 = arith.constant 0 : index
    %66 = vector.load %arg16[%c0_46, %c1_47, %c0_48, %c0_49] : memref<2x2x8x8xf32, #tpu.memory_space<vmem>>, vector<1x1x8x8xf32>
    %67 = vector.shape_cast %66 : vector<1x1x8x8xf32> to vector<8x8xf32>
    %68 = vector.shape_cast %65 : vector<8x8xf32> to vector<1x1x8x8xf32>
    tpu.vector_store %arg16[%c0_46, %c1_47, %c0_48, %c0_49], %68 {strides = array<i32>} : memref<2x2x8x8xf32, #tpu.memory_space<vmem>>, vector<1x1x8x8xf32>,
    %cst_50 = arith.constant dense<0.000000e+00> : vector<8x16xf32>
    %69 = tpu.matmul %65, %54, %cst_50 {dimension_numbers = #tpu.dot_dimension_numbers<[1], [0], [0], [1], [0, 0, 1, 1], [], []>} : vector<8x8xf32>, vector<8x16xf32>, vector<8x16xf32> -> vector<8x16xf32>
    %c8_51 = arith.constant 8 : index
    %c0_52 = arith.constant 0 : index
    %70 = vector.load %arg18[%c8_51, %c0_52] : memref<16x32xf32, #tpu.memory_space<vmem>>, vector<8x16xf32>
    tpu.vector_store %arg18[%c8_51, %c0_52], %69 {strides = array<i32>} : memref<16x32xf32, #tpu.memory_space<vmem>>, vector<8x16xf32>,
    %c8_53 = arith.constant 8 : index
    %c16_54 = arith.constant 16 : index
    %71 = vector.load %arg17[%c8_53, %c16_54] : memref<16x96xf32, #tpu.memory_space<vmem>>, vector<8x16xf32>
    %cst_55 = arith.constant 2.500000e-01 : f32
    %72 = vector.broadcast %cst_55 : f32 to vector<8x16xf32>
    %73 = arith.mulf %71, %72 : vector<8x16xf32>
    %c8_56 = arith.constant 8 : index
    %c48_57 = arith.constant 48 : index
    %74 = vector.load %arg17[%c8_56, %c48_57] : memref<16x96xf32, #tpu.memory_space<vmem>>, vector<8x16xf32>
    %c8_58 = arith.constant 8 : index
    %c80_59 = arith.constant 80 : index
    %75 = vector.load %arg17[%c8_58, %c80_59] : memref<16x96xf32, #tpu.memory_space<vmem>>, vector<8x16xf32>
    %cst_60 = arith.constant dense<0.000000e+00> : vector<8x8xf32>
    %76 = tpu.matmul %73, %74, %cst_60 {dimension_numbers = #tpu.dot_dimension_numbers<[1], [1], [0], [0], [0, 0, 1, 0], [], []>} : vector<8x16xf32>, vector<8x16xf32>, vector<8x8xf32> -> vector<8x8xf32>
    %cst_61 = arith.constant dense<0xFF800000> : vector<8xf32>
    %77 = vector.multi_reduction <maximumf>, %76, %cst_61 [1] : vector<8x8xf32> to vector<8xf32>
    %78 = vector.shape_cast %77 : vector<8xf32> to vector<8x1xf32>
    %79 = vector.broadcast %78 : vector<8x1xf32> to vector<8x8xf32>
    %80 = arith.subf %76, %79 : vector<8x8xf32>
    %81 = math.exp %80 : vector<8x8xf32>
    %cst_62 = arith.constant dense<0.000000e+00> : vector<8xf32>
    %82 = vector.multi_reduction <add>, %81, %cst_62 [1] : vector<8x8xf32> to vector<8xf32>
    %83 = vector.shape_cast %82 : vector<8xf32> to vector<8x1xf32>
    %84 = tpu.reciprocal %83 {approx = true} : vector<8x1xf32> -> vector<8x1xf32>
    %85 = vector.broadcast %84 : vector<8x1xf32> to vector<8x8xf32>
    %86 = arith.mulf %81, %85 : vector<8x8xf32>
    %c1_63 = arith.constant 1 : index
    %c1_64 = arith.constant 1 : index
    %c0_65 = arith.constant 0 : index
    %c0_66 = arith.constant 0 : index
    %87 = vector.load %arg16[%c1_63, %c1_64, %c0_65, %c0_66] : memref<2x2x8x8xf32, #tpu.memory_space<vmem>>, vector<1x1x8x8xf32>
    %88 = vector.shape_cast %87 : vector<1x1x8x8xf32> to vector<8x8xf32>
    %89 = vector.shape_cast %86 : vector<8x8xf32> to vector<1x1x8x8xf32>
    tpu.vector_store %arg16[%c1_63, %c1_64, %c0_65, %c0_66], %89 {strides = array<i32>} : memref<2x2x8x8xf32, #tpu.memory_space<vmem>>, vector<1x1x8x8xf32>,
    %cst_67 = arith.constant dense<0.000000e+00> : vector<8x16xf32>
    %90 = tpu.matmul %86, %75, %cst_67 {dimension_numbers = #tpu.dot_dimension_numbers<[1], [0], [0], [1], [0, 0, 1, 1], [], []>} : vector<8x8xf32>, vector<8x16xf32>, vector<8x16xf32> -> vector<8x16xf32>
    %c8_68 = arith.constant 8 : index
    %c16_69 = arith.constant 16 : index
    %91 = vector.load %arg18[%c8_68, %c16_69] : memref<16x32xf32, #tpu.memory_space<vmem>>, vector<8x16xf32>
    tpu.vector_store %arg18[%c8_68, %c16_69], %90 {strides = array<i32>} : memref<16x32xf32, #tpu.memory_space<vmem>>, vector<8x16xf32>,
    %c0_70 = arith.constant 0 : index
    %c0_71 = arith.constant 0 : index
    %92 = vector.load %arg18[%c0_70, %c0_71] : memref<16x32xf32, #tpu.memory_space<vmem>>, vector<16x32xf32>
    %c0_72 = arith.constant 0 : index
    %c0_73 = arith.constant 0 : index
    %93 = vector.load %arg5[%c0_72, %c0_73] : memref<32x32xf32, #tpu.memory_space<vmem>>, vector<32x32xf32>
    %cst_74 = arith.constant dense<0.000000e+00> : vector<16x32xf32>
    %94 = tpu.matmul %92, %93, %cst_74 {dimension_numbers = #tpu.dot_dimension_numbers<[1], [0], [0], [1], [0, 0, 1, 1], [], []>} : vector<16x32xf32>, vector<32x32xf32>, vector<16x32xf32> -> vector<16x32xf32>
    %c0_75 = arith.constant 0 : index
    %c0_76 = arith.constant 0 : index
    %95 = vector.load %arg6[%c0_75, %c0_76] : memref<1x32xf32, #tpu.memory_space<vmem>>, vector<1x32xf32>
    %96 = vector.broadcast %95 : vector<1x32xf32> to vector<16x32xf32>
    %97 = arith.addf %94, %96 : vector<16x32xf32>
    %98 = arith.addf %97, %0 : vector<16x32xf32>
    %c0_77 = arith.constant 0 : index
    %c0_78 = arith.constant 0 : index
    %99 = vector.load %arg7[%c0_77, %c0_78] : memref<1x32xf32, #tpu.memory_space<vmem>>, vector<1x32xf32>
    %c0_79 = arith.constant 0 : index
    %c0_80 = arith.constant 0 : index
    %100 = vector.load %arg8[%c0_79, %c0_80] : memref<1x32xf32, #tpu.memory_space<vmem>>, vector<1x32xf32>
    %cst_81 = arith.constant dense<0.000000e+00> : vector<16xf32>
    %101 = vector.multi_reduction <add>, %98, %cst_81 [1] : vector<16x32xf32> to vector<16xf32>
    %102 = vector.shape_cast %101 : vector<16xf32> to vector<16x1xf32>
    %cst_82 = arith.constant 3.200000e+01 : f32
    %103 = vector.broadcast %cst_82 : f32 to vector<16x1xf32>
    %104 = arith.divf %102, %103 : vector<16x1xf32>
    %105 = vector.broadcast %104 : vector<16x1xf32> to vector<16x32xf32>
    %106 = arith.subf %98, %105 : vector<16x32xf32>
    %107 = arith.mulf %106, %106 : vector<16x32xf32>
    %cst_83 = arith.constant dense<0.000000e+00> : vector<16xf32>
    %108 = vector.multi_reduction <add>, %107, %cst_83 [1] : vector<16x32xf32> to vector<16xf32>
    %109 = vector.shape_cast %108 : vector<16xf32> to vector<16x1xf32>
    %cst_84 = arith.constant 3.200000e+01 : f32
    %110 = vector.broadcast %cst_84 : f32 to vector<16x1xf32>
    %111 = arith.divf %109, %110 : vector<16x1xf32>
    %112 = vector.broadcast %104 : vector<16x1xf32> to vector<16x32xf32>
    %113 = arith.subf %98, %112 : vector<16x32xf32>
    %cst_85 = arith.constant 9.99999974E-6 : f32
    %114 = vector.broadcast %cst_85 : f32 to vector<16x1xf32>
    %115 = arith.addf %111, %114 : vector<16x1xf32>
    %116 = math.rsqrt %115 : vector<16x1xf32>
    %117 = vector.broadcast %116 : vector<16x1xf32> to vector<16x32xf32>
    %118 = arith.mulf %113, %117 : vector<16x32xf32>
    %119 = vector.broadcast %99 : vector<1x32xf32> to vector<16x32xf32>
    %120 = arith.mulf %118, %119 : vector<16x32xf32>
    %121 = vector.broadcast %100 : vector<1x32xf32> to vector<16x32xf32>
    %122 = arith.addf %120, %121 : vector<16x32xf32>
    %123 = vector.broadcast %1 : vector<16x1xf32> to vector<16x32xf32>
    %124 = arith.mulf %122, %123 : vector<16x32xf32>
    %c0_86 = arith.constant 0 : index
    %c0_87 = arith.constant 0 : index
    %125 = vector.load %arg9[%c0_86, %c0_87] : memref<32x64xf32, #tpu.memory_space<vmem>>, vector<32x64xf32>
    %cst_88 = arith.constant dense<0.000000e+00> : vector<16x64xf32>
    %126 = tpu.matmul %124, %125, %cst_88 {dimension_numbers = #tpu.dot_dimension_numbers<[1], [0], [0], [1], [0, 0, 1, 1], [], []>} : vector<16x32xf32>, vector<32x64xf32>, vector<16x64xf32> -> vector<16x64xf32>
    %c0_89 = arith.constant 0 : index
    %c0_90 = arith.constant 0 : index
    %127 = vector.load %arg10[%c0_89, %c0_90] : memref<1x64xf32, #tpu.memory_space<vmem>>, vector<1x64xf32>
    %128 = vector.broadcast %127 : vector<1x64xf32> to vector<16x64xf32>
    %129 = arith.addf %126, %128 : vector<16x64xf32>
    %cst_91 = arith.constant 0.000000e+00 : f32
    %130 = vector.broadcast %cst_91 : f32 to vector<16x64xf32>
    %131 = arith.maximumf %129, %130 : vector<16x64xf32>
    %c0_92 = arith.constant 0 : index
    %c0_93 = arith.constant 0 : index
    %132 = vector.load %arg11[%c0_92, %c0_93] : memref<64x32xf32, #tpu.memory_space<vmem>>, vector<64x32xf32>
    %cst_94 = arith.constant dense<0.000000e+00> : vector<16x32xf32>
    %133 = tpu.matmul %131, %132, %cst_94 {dimension_numbers = #tpu.dot_dimension_numbers<[1], [0], [0], [1], [0, 0, 1, 1], [], []>} : vector<16x64xf32>, vector<64x32xf32>, vector<16x32xf32> -> vector<16x32xf32>
    %c0_95 = arith.constant 0 : index
    %c0_96 = arith.constant 0 : index
    %134 = vector.load %arg12[%c0_95, %c0_96] : memref<1x32xf32, #tpu.memory_space<vmem>>, vector<1x32xf32>
    %135 = vector.broadcast %134 : vector<1x32xf32> to vector<16x32xf32>
    %136 = arith.addf %133, %135 : vector<16x32xf32>
    %137 = arith.addf %136, %124 : vector<16x32xf32>
    %c0_97 = arith.constant 0 : index
    %c0_98 = arith.constant 0 : index
    %138 = vector.load %arg13[%c0_97, %c0_98] : memref<1x32xf32, #tpu.memory_space<vmem>>, vector<1x32xf32>
    %c0_99 = arith.constant 0 : index
    %c0_100 = arith.constant 0 : index
    %139 = vector.load %arg14[%c0_99, %c0_100] : memref<1x32xf32, #tpu.memory_space<vmem>>, vector<1x32xf32>
    %cst_101 = arith.constant dense<0.000000e+00> : vector<16xf32>
    %140 = vector.multi_reduction <add>, %137, %cst_101 [1] : vector<16x32xf32> to vector<16xf32>
    %141 = vector.shape_cast %140 : vector<16xf32> to vector<16x1xf32>
    %cst_102 = arith.constant 3.200000e+01 : f32
    %142 = vector.broadcast %cst_102 : f32 to vector<16x1xf32>
    %143 = arith.divf %141, %142 : vector<16x1xf32>
    %144 = vector.broadcast %143 : vector<16x1xf32> to vector<16x32xf32>
    %145 = arith.subf %137, %144 : vector<16x32xf32>
    %146 = arith.mulf %145, %145 : vector<16x32xf32>
    %cst_103 = arith.constant dense<0.000000e+00> : vector<16xf32>
    %147 = vector.multi_reduction <add>, %146, %cst_103 [1] : vector<16x32xf32> to vector<16xf32>
    %148 = vector.shape_cast %147 : vector<16xf32> to vector<16x1xf32>
    %cst_104 = arith.constant 3.200000e+01 : f32
    %149 = vector.broadcast %cst_104 : f32 to vector<16x1xf32>
    %150 = arith.divf %148, %149 : vector<16x1xf32>
    %151 = vector.broadcast %143 : vector<16x1xf32> to vector<16x32xf32>
    %152 = arith.subf %137, %151 : vector<16x32xf32>
    %cst_105 = arith.constant 9.99999974E-6 : f32
    %153 = vector.broadcast %cst_105 : f32 to vector<16x1xf32>
    %154 = arith.addf %150, %153 : vector<16x1xf32>
    %155 = math.rsqrt %154 : vector<16x1xf32>
    %156 = vector.broadcast %155 : vector<16x1xf32> to vector<16x32xf32>
    %157 = arith.mulf %152, %156 : vector<16x32xf32>
    %158 = vector.broadcast %138 : vector<1x32xf32> to vector<16x32xf32>
    %159 = arith.mulf %157, %158 : vector<16x32xf32>
    %160 = vector.broadcast %139 : vector<1x32xf32> to vector<16x32xf32>
    %161 = arith.addf %159, %160 : vector<16x32xf32>
    %162 = vector.broadcast %1 : vector<16x1xf32> to vector<16x32xf32>
    %163 = arith.mulf %161, %162 : vector<16x32xf32>
    %c0_106 = arith.constant 0 : index
    %c0_107 = arith.constant 0 : index
    %164 = vector.load %arg15[%c0_106, %c0_107] : memref<16x32xf32, #tpu.memory_space<vmem>>, vector<16x32xf32>
    tpu.vector_store %arg15[%c0_106, %c0_107], %163 {strides = array<i32>} : memref<16x32xf32, #tpu.memory_space<vmem>>, vector<16x32xf32>,
    return
  }
  func.func @transform_0(%arg0: i32) -> (i32, i32) {
    %c0_i32 = arith.constant 0 : i32
    %c0_i32_0 = arith.constant 0 : i32
    %c0_i32_1 = arith.constant 0 : i32
    return %c0_i32, %c0_i32_0 : i32, i32
  }
  func.func @transform_1(%arg0: i32) -> (i32, i32) {
    %c0_i32 = arith.constant 0 : i32
    %c0_i32_0 = arith.constant 0 : i32
    %c0_i32_1 = arith.constant 0 : i32
    return %c0_i32, %c0_i32_0 : i32, i32
  }
  func.func @transform_2(%arg0: i32) -> (i32, i32) {
    %c0_i32 = arith.constant 0 : i32
    %c0_i32_0 = arith.constant 0 : i32
    %c0_i32_1 = arith.constant 0 : i32
    return %c0_i32, %c0_i32_0 : i32, i32
  }
  func.func @transform_3(%arg0: i32) -> (i32, i32) {
    %c0_i32 = arith.constant 0 : i32
    %c0_i32_0 = arith.constant 0 : i32
    %c0_i32_1 = arith.constant 0 : i32
    return %c0_i32, %c0_i32_0 : i32, i32
  }
  func.func @transform_4(%arg0: i32) -> (i32, i32) {
    %c0_i32 = arith.constant 0 : i32
    %c0_i32_0 = arith.constant 0 : i32
    %c0_i32_1 = arith.constant 0 : i32
    return %c0_i32, %c0_i32_0 : i32, i32
  }
  func.func @transform_5(%arg0: i32) -> (i32, i32) {
    %c0_i32 = arith.constant 0 : i32
    %c0_i32_0 = arith.constant 0 : i32
    %c0_i32_1 = arith.constant 0 : i32
    return %c0_i32, %c0_i32_0 : i32, i32
  }
  func.func @transform_6(%arg0: i32) -> (i32, i32) {
    %c0_i32 = arith.constant 0 : i32
    %c0_i32_0 = arith.constant 0 : i32
    %c0_i32_1 = arith.constant 0 : i32
    return %c0_i32, %c0_i32_0 : i32, i32
  }
  func.func @transform_7(%arg0: i32) -> (i32, i32) {
    %c0_i32 = arith.constant 0 : i32
    %c0_i32_0 = arith.constant 0 : i32
    %c0_i32_1 = arith.constant 0 : i32
    return %c0_i32, %c0_i32_0 : i32, i32
  }
  func.func @transform_8(%arg0: i32) -> (i32, i32) {
    %c0_i32 = arith.constant 0 : i32
    %c0_i32_0 = arith.constant 0 : i32
    %c0_i32_1 = arith.constant 0 : i32
    return %c0_i32, %c0_i32_0 : i32, i32
  }
  func.func @transform_9(%arg0: i32) -> (i32, i32) {
    %c0_i32 = arith.constant 0 : i32
    %c0_i32_0 = arith.constant 0 : i32
    %c0_i32_1 = arith.constant 0 : i32
    return %c0_i32, %c0_i32_0 : i32, i32
  }
  func.func @transform_10(%arg0: i32) -> (i32, i32) {
    %c0_i32 = arith.constant 0 : i32
    %c0_i32_0 = arith.constant 0 : i32
    %c0_i32_1 = arith.constant 0 : i32
    return %c0_i32, %c0_i32_0 : i32, i32
  }
  func.func @transform_11(%arg0: i32) -> (i32, i32) {
    %c0_i32 = arith.constant 0 : i32
    %c0_i32_0 = arith.constant 0 : i32
    %c0_i32_1 = arith.constant 0 : i32
    return %c0_i32, %c0_i32_0 : i32, i32
  }
  func.func @transform_12(%arg0: i32) -> (i32, i32) {
    %c0_i32 = arith.constant 0 : i32
    %c0_i32_0 = arith.constant 0 : i32
    %c0_i32_1 = arith.constant 0 : i32
    return %c0_i32, %c0_i32_0 : i32, i32
  }
  func.func @transform_13(%arg0: i32) -> (i32, i32) {
    %c0_i32 = arith.constant 0 : i32
    %c0_i32_0 = arith.constant 0 : i32
    %c0_i32_1 = arith.constant 0 : i32
    return %c0_i32, %c0_i32_0 : i32, i32
  }
  func.func @transform_14(%arg0: i32) -> (i32, i32) {
    %c0_i32 = arith.constant 0 : i32
    %c0_i32_0 = arith.constant 0 : i32
    %c0_i32_1 = arith.constant 0 : i32
    return %c0_i32, %c0_i32_0 : i32, i32
  }
  func.func @transform_15(%arg0: i32) -> (i32, i32, i32, i32) {
    %c0_i32 = arith.constant 0 : i32
    %c0_i32_0 = arith.constant 0 : i32
    %c0_i32_1 = arith.constant 0 : i32
    %c0_i32_2 = arith.constant 0 : i32
    %c0_i32_3 = arith.constant 0 : i32
    return %c0_i32, %c0_i32_0, %c0_i32_1, %c0_i32_2 : i32, i32, i32, i32
  }
}

</mosaic_0001>

<bundles_post_ra>
// kernel: encoder_layer.1
= control target key start
LH: loop header
LB: loop body
LE: loop exit
PB: predicated region body
PF: predicated region fallthrough
CT: control target
= control target key end

     0   :  { %21 = vsyncpa [#allocation5], 0  ;;  %vm66_vm0 = vcmask 261120   ;;  %s1879_s0 = inlined_call_operand.vmem [shape: f32[16,32], index: 0, kind: input, shape index: {}]   ;;  %s1880_s1 = inlined_call_operand.vmem [shape: f32[16,1], index: 1, kind: input, shape index: {}]   ;;  %s1881_s2 = inlined_call_operand.vmem [shape: f32[32,96], index: 2, kind: input, shape index: {}]   ;;  %s1882_s3 = inlined_call_operand.vmem [shape: f32[1,96], index: 3, kind: input, shape index: {}]   ;;  %s1883_s4 = inlined_call_operand.vmem [shape: f32[32,32], index: 4, kind: input, shape index: {}]   ;;  %s1884_s5 = inlined_call_operand.vmem [shape: f32[1,32], index: 5, kind: input, shape index: {}]   ;;  %s1885_s6 = inlined_call_operand.vmem [shape: f32[1,32], index: 6, kind: input, shape index: {}]   ;;  %s1886_s7 = inlined_call_operand.vmem [shape: f32[1,32], index: 7, kind: input, shape index: {}]   ;;  %s1887_s8 = inlined_call_operand.vmem [shape: f32[32,64], index: 8, kind: input, shape index: {}]   ;;  %s1888_s9 = inlined_call_operand.vmem [shape: f32[1,64], index: 9, kind: input, shape index: {}]   ;;  %s1889_s10 = inlined_call_operand.vmem [shape: f32[64,32], index: 10, kind: input, shape index: {}]   ;;  %s1890_s11 = inlined_call_operand.vmem [shape: f32[1,32], index: 11, kind: input, shape index: {}]   ;;  %s1891_s12 = inlined_call_operand.vmem [shape: f32[1,32], index: 12, kind: input, shape index: {}]   ;;  %s1892_s13 = inlined_call_operand.vmem [shape: f32[1,32], index: 13, kind: input, shape index: {}]   ;;  %s1893_s14 = inlined_call_operand.hbm [shape: f32[16,32], index: 14, kind: output, shape index: {0}]   ;;  %s1894_s15 = inlined_call_operand.hbm [shape: f32[2,2,8,8], index: 15, kind: output, shape index: {1}]  }
   0x1   :  { %v55_v0 = vld [vmem:[%s1881_s2] sm:$0xff]  ;;  %v56_v1 = vld [vmem:[%s1881_s2 + $0x8] sm:$0xff]  ;;  %v57_v2 = vld [vmem:[%s1881_s2 + $0x10] sm:$0xff] }
   0x2   :  { %v1435_v3 = vpack.c.bf16 %v56_v1, %v55_v0  ;;  %v58_v4 = vld [vmem:[%s1881_s2 + $0x18] sm:$0xff]  ;;  %v1670_v5 = vld [vmem:[%s1879_s0] sm:$0xff] }
   0x3   :  { %v1439_v6 = vpack.c.bf16 %v58_v4, %v57_v2  ;;  %1351 = vmatprep.mubr.msk.f32.mxu1 %vm66_vm0, %v1670_v5 }
   0x4   :  { %22 = vsyncpa [#allocation7], 0  ;;  %1436 = vmatprep.subr.bf16.mxu1 %v1435_v3  ;;  %v1677_v7 = vld [vmem:[%s1879_s0 + $0x8] sm:$0xff]  ;;  %v1562_v8 = vmov 0.0   ;;  %v1271_v9 = vld [vmem:[%s1882_s3] ss:$0 sm:$0xff] }
   0x5   :  { %1438 = vmatpush3.bf16.msra.mxu1 %v1435_v3  ;;  %1364 = vmatprep.subr.mxu0 %v1562_v8  ;;  %vm148_vm1 = vcmask 785408   ;;  %vm1563_vm2 = vmmov 0   ;;  %s1564_s0 = smov 96   ;;  %s1565_s3 = smov 112   ;;  %vm156_vm3 = vcmask 130048   ;;  %vm232_vm4 = vcmask 64512  }
   0x6   :  { %1440 = vmatprep.subr.bf16.mxu1 %v1439_v6  ;;  %1366 = vmatprep.mubr.msk.f32.mxu0 %vm1563_vm2, %v1562_v8  ;;  %s1566_s16 = smov 80   ;;  %s1567_s17 = smov 64   ;;  %vm497_vm5 = vcmask 261248   ;;  %vm1107_vm6 = vcmask 523264  }
   0x7   :  { %s1568_s18 = smov 48   ;;  %s1569_s27 = smov 16  }
   0x9   :  { %1442 = vmatpush3.bf16.msra.mxu1 %v1439_v6 }
   0xa   :  { %1354 = vmatprep.subr.mxu1 %v1562_v8 }
   0xc   :  { %1352 = vmatmul.mubr.msk.f32.vlgmr.msra.gmra.mrb[0].mxu1 %vm66_vm0, %v1677_v7 }
   0xd   :  { %1356 = vmatprep.mubr.msk.f32.mxu1 %vm1563_vm2, %v1562_v8 }
  0xdf   :  { %v1353_v10 = vpop.f32.mrb[0].mxu1 }
  0xe0   :  { %v145_v11 = vadd.f32 %v1353_v10, %v1271_v9  ;;  %v139_v12 = vpop.f32.mrb[1].mxu1 }
  0xe1   :  { %v140_v13 = vadd.f32 %v1271_v9, %v139_v12  ;;  %v848_v12 = vld [vmem:[%s1883_s4 + $0x8] sm:$0xff] }
  0xe2   :  { %150 = vst.msk [vmem:[#allocation2 + $0x8] sm:$0xff] %vm148_vm1, %v145_v11  ;;  %v847_v11 = vld [vmem:[%s1883_s4] sm:$0xff] }
  0xe3   :  { %149 = vst.msk [vmem:[#allocation2] sm:$0xff] %vm148_vm1, %v140_v13  ;;  %v1443_v13 = vpack.c.bf16 %v848_v12, %v847_v11 }
  0xe9   :  { %v1695_v16 = vld [vmem:[#allocation2 + $0x8] sm:$0xff] }
  0xea   :  { %v1690_v14 = vld [vmem:[#allocation2] sm:$0xff]  ;;  %v500_v17 = vmul.f32 0.25, %v1695_v16 }
  0xeb   :  { %154 = vrot.lane.b32.xlu0 %v1690_v14, %s1564_s0  ;;  %v152_v15 = vmul.f32 0.25, %v1690_v14 }
  0xed   :  { %325 = vrot.lane.b32.xlu1 %v152_v15, %s1565_s3 }
  0xef   :  { %328 = vrot.lane.b32.xlu0 %v1690_v14, %s1566_s16 }
  0xf1   :  { %502 = vrot.lane.b32.xlu1 %v1695_v16, %s1564_s0 }
  0xf3   :  { %675 = vrot.lane.b32.xlu0 %v1695_v16, %s1566_s16 }
  0xf5   :  { %672 = vrot.lane.b32.xlu1 %v500_v17, %s1565_s3 }
 0x15d   :  { %v155_v18 = vpop.permute.xlu0 %154 }
 0x15e   :  { %1355 = vmatpush3.xpose.msk.msra.mxu1 %vm156_vm3, %v155_v18 }
 0x15f   :  { %v326_v19 = vpop.permute.xlu1 %325  ;;  %1359 = vmatprep.subr.mxu1 %v1562_v8 }
 0x161   :  { %v329_v20 = vpop.permute.xlu0 %328  ;;  %1357 = vmatmul.mubr.msk.f32.vlgmr.msra.gmra.mrb[2].mxu1 %vm156_vm3, %v152_v15  ;;  %v849_v15 = vld [vmem:[%s1883_s4 + $0x10] sm:$0xff] }
 0x162   :  { %1365 = vmatpush3.xpose.msk.msra.mxu0 %vm156_vm3, %v329_v20  ;;  %1361 = vmatprep.mubr.msk.f32.mxu1 %vm1563_vm2, %v1562_v8 }
 0x163   :  { %1374 = vmatprep.subr.mxu0 %v1562_v8  ;;  %v503_v21 = vpop.permute.xlu1 %502 }
 0x165   :  { %1367 = vmatmul.mubr.msk.f32.vlgmr.msra.gmra.mrb[0].mxu0 %vm156_vm3, %v326_v19  ;;  %v676_v22 = vpop.permute.xlu0 %675 }
 0x166   :  { %1375 = vmatpush3.xpose.msk.msra.mxu0 %vm156_vm3, %v503_v21  ;;  %1376 = vmatprep.mubr.msk.f32.mxu0 %vm1563_vm2, %v1562_v8 }
 0x167   :  { %1384 = vmatprep.subr.mxu0 %v1562_v8  ;;  %v673_v23 = vpop.permute.xlu1 %672 }
 0x169   :  { %1377 = vmatmul.mubr.msk.f32.vlgmr.msra.gmra.mrb[2].mxu0 %vm156_vm3, %v500_v17 }
 0x16a   :  { %1385 = vmatpush3.xpose.msk.msra.mxu0 %vm156_vm3, %v676_v22  ;;  %1386 = vmatprep.mubr.msk.f32.mxu0 %vm1563_vm2, %v1562_v8 }
 0x16b   :  { %1444 = vmatprep.subr.bf16.mxu0 %v1443_v13 }
 0x16d   :  { %1387 = vmatmul.mubr.msk.f32.vlgmr.msra.gmra.mrb[4].mxu0 %vm156_vm3, %v673_v23 }
 0x16e   :  { %1446 = vmatpush3.bf16.msra.mxu0 %v1443_v13  ;;  %v1290_v13 = vld [vmem:[%s1886_s7] ss:$0 sm:$0xff] }
 0x234   :  { %v228_v24 = vpop.f32.mrb[2].mxu1 }
 0x235   :  { %v1358_v25 = vpop.f32.mrb[3].mxu1  ;;  %v233_v26 = vsel %vm232_vm4, %v228_v24, -inf }
 0x236   :  { %234 = vmax.xlane.f32.xlu0 %v233_v26 }
 0x238   :  { %v400_v27 = vpop.f32.mrb[0].mxu0 }
 0x239   :  { %v1368_v28 = vpop.f32.mrb[1].mxu0  ;;  %v404_v29 = vsel %vm232_vm4, %v400_v27, -inf }
 0x23a   :  { %405 = vmax.xlane.f32.xlu1 %v404_v29  ;;  %v1286_v28 = vld [vmem:[%s1884_s5] ss:$0 sm:$0xff] }
 0x23c   :  { %v575_v30 = vpop.f32.mrb[2].mxu0 }
 0x23d   :  { %v1378_v31 = vpop.f32.mrb[3].mxu0  ;;  %v579_v32 = vsel %vm232_vm4, %v575_v30, -inf }
 0x23e   :  { %580 = vmax.xlane.f32.xlu0 %v579_v32 }
 0x240   :  { %v747_v33 = vpop.f32.mrb[4].mxu0 }
 0x241   :  { %v1388_v34 = vpop.f32.mrb[5].mxu0  ;;  %v751_v35 = vsel %vm232_vm4, %v747_v33, -inf }
 0x242   :  { %752 = vmax.xlane.f32.xlu0 %v751_v35 }
 0x24b   :  { %245 = vrot.lane.b32.xlu1 %v1690_v14, %s1567_s17 }
 0x2c3   :  { %v235_v36 = vpop.xlane.xlu0 %234 }
 0x2c4   :  { %v236_v37 = vsub.f32 %v228_v24, %v235_v36 }
 0x2c6   :  { %v237_v38 = vmul.f32 1.442695, %v236_v37  ;;  %v1570_v37 = vmov 0  }
 0x2c7   :  { %v406_v39 = vpop.xlane.xlu1 %405  ;;  %1489 = vset.pattern.permute.xlu0 %v1570_v37  ;;  %1488 = vset.pattern.permute.xlu1 %v1570_v37 }
 0x2c8   :  { %1490 = vpow2.f32 %v237_v38  ;;  %v407_v40 = vsub.f32 %v400_v27, %v406_v39  ;;  %v53_v38 = vld [vmem:[%s1880_s1] sm:$0xff] }
 0x2ca   :  { %v408_v41 = vmul.f32 1.442695, %v407_v40 }
 0x2cb   :  { %v246_v42 = vpop.permute.xlu1 %245  ;;  %v581_v43 = vpop.xlane.xlu0 %580 }
 0x2cc   :  { %1492 = vpow2.f32 %v408_v41  ;;  %v582_v44 = vsub.f32 %v575_v30, %v581_v43  ;;  %1360 = vmatpush3.msra.mxu1 %v246_v42 }
 0x2cd   :  { %1369 = vmatprep.subr.mxu1 %v1562_v8 }
 0x2ce   :  { %v583_v45 = vmul.f32 1.442695, %v582_v44 }
 0x2cf   :  { %v753_v46 = vpop.xlane.xlu0 %752 }
 0x2d0   :  { %1494 = vpow2.f32 %v583_v45  ;;  %v754_v47 = vsub.f32 %v747_v33, %v753_v46 }
 0x2d2   :  { %v1491_v48 = vpop.eup %1490  ;;  %v755_v49 = vmul.f32 1.442695, %v754_v47  ;;  %v998_v47 = vld [vmem:[%s1887_s8] sm:$0xff] }
 0x2d3   :  { %v239_v50 = vsel %vm232_vm4, %v1491_v48, 0.0 }
 0x2d4   :  { %1496 = vpow2.f32 %v755_v49  ;;  %240 = vadd.xlane.f32.xlu1 %v239_v50  ;;  %v54_v49 = vld [vmem:[%s1880_s1 + $0x8] sm:$0xff] }
 0x2d6   :  { %v1493_v51 = vpop.eup %1492 }
 0x2d7   :  { %v410_v52 = vsel %vm232_vm4, %v1493_v51, 0.0 }
 0x2d8   :  { %411 = vadd.xlane.f32.xlu0 %v410_v52  ;;  %v1001_v52 = vld [vmem:[%s1887_s8 + $0x18] sm:$0xff] }
 0x2da   :  { %v1495_v53 = vpop.eup %1494 }
 0x2db   :  { %v585_v54 = vsel %vm232_vm4, %v1495_v53, 0.0 }
 0x2dc   :  { %586 = vadd.xlane.f32.xlu1 %v585_v54  ;;  %v1092_v54 = vld [vmem:[%s1889_s10] sm:$0xff] }
 0x2de   :  { %v1497_v55 = vpop.eup %1496 }
 0x2df   :  { %v757_v56 = vsel %vm232_vm4, %v1497_v55, 0.0 }
 0x2e0   :  { %758 = vadd.xlane.f32.xlu0 %v757_v56  ;;  %v1094_v56 = vld [vmem:[%s1889_s10 + $0x10] sm:$0xff] }
 0x2ed   :  { %592 = vrot.lane.b32.xlu1 %v1695_v16, %s1567_s17 }
 0x2f1   :  { %764 = vrot.lane.b32.xlu1 %v1695_v16, %s1568_s18 }
 0x2f6   :  { %417 = vrot.lane.b32.xlu0 %v1690_v14, %s1568_s18 }
 0x361   :  { %v241_v57 = vpop.xlane.xlu1 %240 }
 0x362   :  { %1498 = vrcp.f32 %v241_v57 }
 0x365   :  { %v412_v58 = vpop.xlane.xlu0 %411 }
 0x366   :  { %1500 = vrcp.f32 %v412_v58  ;;  %v1095_v58 = vld [vmem:[%s1889_s10 + $0x18] sm:$0xff] }
 0x369   :  { %v587_v59 = vpop.xlane.xlu1 %586 }
 0x36a   :  { %1502 = vrcp.f32 %v587_v59  ;;  %v1463_v59 = vpack.c.bf16 %v1095_v58, %v1094_v56 }
 0x36c   :  { %v1499_v60 = vpop.eup %1498 }
 0x36d   :  { %v243_v61 = vmul.f32 %v1499_v60, %v1491_v48  ;;  %v759_v62 = vpop.xlane.xlu0 %758  ;;  %v593_v1 = vpop.permute.xlu1 %592  ;;  %v999_v48 = vld [vmem:[%s1887_s8 + $0x8] sm:$0xff]  ;;  %v1096_v60 = vld [vmem:[%s1889_s10 + $0x20] sm:$0xff] }
 0x36e   :  { %1504 = vrcp.f32 %v759_v62  ;;  %v1451_v50 = vpack.c.bf16 %v999_v48, %v998_v47 }
 0x36f   :  { %244 = vst.msk [vmem:[#allocation6] sm:$0xff] %vm232_vm4, %v243_v61  ;;  %1362 = vmatmul.mubr.msk.f32.vlgmr.msra.gmra.mrb[4].mxu1 %vm232_vm4, %v243_v61  ;;  %v1097_v61 = vld [vmem:[%s1889_s10 + $0x28] sm:$0xff] }
 0x370   :  { %v1501_v63 = vpop.eup %1500  ;;  %1371 = vmatprep.mubr.msk.f32.mxu1 %vm1563_vm2, %v1562_v8  ;;  %v1467_v62 = vpack.c.bf16 %v1097_v61, %v1096_v60 }
 0x371   :  { %v414_v0 = vmul.f32 %v1501_v63, %v1493_v51  ;;  %v418_v2 = vpop.permute.xlu0 %417  ;;  %v765_v6 = vpop.permute.xlu1 %764  ;;  %v1000_v51 = vld [vmem:[%s1887_s8 + $0x10] sm:$0xff] }
 0x372   :  { %1370 = vmatpush3.msra.mxu1 %v418_v2 }
 0x373   :  { %416 = vst.msk [vmem:[#allocation6 + $0x10] sm:$0xff] %vm232_vm4, %v414_v0  ;;  %1372 = vmatmul.mubr.msk.f32.vlgmr.msra.gmra.mrb[6].mxu1 %vm232_vm4, %v414_v0  ;;  %1379 = vmatprep.subr.mxu1 %v1562_v8 }
 0x374   :  { %v1503_v3 = vpop.eup %1502  ;;  %1380 = vmatpush3.msra.mxu1 %v593_v1  ;;  %1381 = vmatprep.mubr.msk.f32.mxu1 %vm1563_vm2, %v1562_v8 }
 0x375   :  { %v589_v4 = vmul.f32 %v1503_v3, %v1495_v53  ;;  %1389 = vmatprep.subr.mxu1 %v1562_v8  ;;  %v1455_v53 = vpack.c.bf16 %v1001_v52, %v1000_v51 }
 0x377   :  { %591 = vst.msk [vmem:[#allocation6 + $0x8] sm:$0xff] %vm232_vm4, %v589_v4  ;;  %1382 = vmatmul.mubr.msk.f32.vlgmr.msra.gmra.mrb[8].mxu1 %vm232_vm4, %v589_v4 }
 0x378   :  { %v1505_v9 = vpop.eup %1504  ;;  %1390 = vmatpush3.msra.mxu1 %v765_v6  ;;  %1391 = vmatprep.mubr.msk.f32.mxu1 %vm1563_vm2, %v1562_v8  ;;  %v850_v8 = vld [vmem:[%s1883_s4 + $0x18] sm:$0xff] }
 0x379   :  { %v761_v10 = vmul.f32 %v1505_v9, %v1497_v55  ;;  %v1447_v17 = vpack.c.bf16 %v850_v8, %v849_v15  ;;  %1452 = vmatprep.subr.bf16.mxu1 %v1451_v50  ;;  %v1093_v55 = vld [vmem:[%s1889_s10 + $0x8] sm:$0xff]  ;;  %v1289_v9 = vld [vmem:[%s1885_s6] ss:$0 sm:$0xff] }
 0x37a   :  { %v1459_v57 = vpack.c.bf16 %v1093_v55, %v1092_v54 }
 0x37b   :  { %763 = vst.msk [vmem:[#allocation6 + $0x18] sm:$0xff] %vm232_vm4, %v761_v10  ;;  %1392 = vmatmul.mubr.msk.f32.vlgmr.msra.gmra.mrb[10].mxu1 %vm232_vm4, %v761_v10  ;;  %1448 = vmatprep.subr.bf16.mxu0 %v1447_v17 }
 0x37c   :  { %1450 = vmatpush3.bf16.msra.mxu0 %v1447_v17  ;;  %1454 = vmatpush3.bf16.msra.mxu1 %v1451_v50 }
 0x37d   :  { %1456 = vmatprep.subr.bf16.mxu1 %v1455_v53  ;;  %1460 = vmatprep.subr.bf16.mxu0 %v1459_v57 }
 0x380   :  { %1458 = vmatpush3.bf16.msra.mxu1 %v1455_v53 }
 0x442   :  { %v317_v14 = vpop.f32.mrb[4].mxu1 }
 0x443   :  { %321 = vst.msk [vmem:[#allocation3] sm:$0xff] %vm156_vm3, %v317_v14  ;;  %v1363_v16 = vpop.f32.mrb[5].mxu1 }
 0x446   :  { %v489_v18 = vpop.f32.mrb[6].mxu1 }
 0x447   :  { %494 = vrot.lane.b32.xlu0 %v489_v18, %s1569_s27  ;;  %v1373_v19 = vpop.f32.mrb[7].mxu1 }
 0x44a   :  { %v664_v20 = vpop.f32.mrb[8].mxu1 }
 0x44b   :  { %668 = vst.msk [vmem:[#allocation3 + $0x8] sm:$0xff] %vm156_vm3, %v664_v20  ;;  %v1383_v21 = vpop.f32.mrb[9].mxu1 }
 0x44c   :  { %v1098_v21 = vld [vmem:[%s1889_s10 + $0x30] sm:$0xff] }
 0x44e   :  { %v836_v22 = vpop.f32.mrb[10].mxu1 }
 0x44f   :  { %841 = vrot.lane.b32.xlu1 %v836_v22, %s1569_s27  ;;  %v1393_v23 = vpop.f32.mrb[11].mxu1  ;;  %v1099_v22 = vld [vmem:[%s1889_s10 + $0x38] sm:$0xff] }
 0x450   :  { %v1471_v23 = vpack.c.bf16 %v1099_v22, %v1098_v21 }
 0x4b9   :  { %v495_v24 = vpop.permute.xlu0 %494 }
 0x4ba   :  { %498 = vst.msk [vmem:[#allocation3] sm:$0xff] %vm497_vm5, %v495_v24  ;;  %v1291_v24 = vld [vmem:[%s1888_s9] ss:$0 sm:$0xff]  ;;  %s1571_s9 = smov [#allocation6]  }
 0x4bb   :  { %s1256_s10 = sshll.u32 %s1571_s9, 4  ;;  %s1257_s10 = int_to_ptr.vmem [resolvable:$true] %s1256_s10 }
 0x4bc   :  { %p1519_p1 = scmp.lt.s32.totalorder %s1257_s10, %s1257_s10 }
 0x4c1   :  { %v842_v25 = vpop.permute.xlu1 %841  ;;  %v845_v26 = vld [vmem:[#allocation3] sm:$0xff] }
 0x4c2   :  { %844 = vst.msk [vmem:[#allocation3 + $0x8] sm:$0xff] %vm497_vm5, %v842_v25  ;;  %1402 = vmatprep.mubr.msk.f32.mxu0 %vm66_vm0, %v845_v26 }
 0x4c9   :  { %v846_v27 = vld [vmem:[#allocation3 + $0x8] sm:$0xff] }
 0x4ca   :  { %1403 = vmatmul.mubr.msk.f32.vlgmr.msra.gmra.mrb[6].mxu0 %vm66_vm0, %v846_v27 }
 0x4cb   :  { %1462 = vmatpush3.bf16.msra.mxu0 %v1459_v57 }
 0x4cc   :  { %1464 = vmatprep.subr.bf16.mxu0 %v1463_v59 }
 0x4cf   :  { %1466 = vmatpush3.bf16.msra.mxu0 %v1463_v59 }
 0x4d0   :  { %1468 = vmatprep.subr.bf16.mxu0 %v1467_v62 }
 0x4d3   :  { %1470 = vmatpush3.bf16.msra.mxu0 %v1467_v62 }
 0x4d4   :  { %1472 = vmatprep.subr.bf16.mxu0 %v1471_v23 }
 0x4d7   :  { %1474 = vmatpush3.bf16.msra.mxu0 %v1471_v23 }
 0x59d   :  { %v1404_v29 = vpop.f32.mrb[6].mxu0 }
 0x59e   :  { %v936_v30 = vadd.f32 %v1404_v29, %v1286_v28  ;;  %v930_v31 = vpop.f32.mrb[7].mxu0 }
 0x59f   :  { %v931_v32 = vadd.f32 %v1286_v28, %v930_v31  ;;  %v1294_v31 = vld [vmem:[%s1890_s11] ss:$0 sm:$0xff]  ;;  %s1514_s11 = scalar_lea.vmem %s1257_s10, 512 }
 0x5a0   :  { %v940_v33 = vadd.f32 %v936_v30, %v1677_v7  ;;  %p1515_p0 = scmp.ne.s32.totalorder %s1257_s10, %s1514_s11  ;;  %p1520_p2 = scmp.lt.s32.totalorder %s1514_s11, %s1514_s11 }
 0x5a1   :  { %v939_v34 = vadd.f32 %v931_v32, %v1670_v5 }
 0x5a2   :  { %v946_v35 = vsel %vm66_vm0, %v940_v33, 0.0  ;;  %p1521_p3 = por %p1520_p2, %p1519_p1 }
 0x5a3   :  { %947 = vadd.xlane.f32.xlu1 %v946_v35  ;;  %v943_v36 = vsel %vm66_vm0, %v939_v34, 0.0 }
 0x5a4   :  { %944 = vadd.xlane.f32.xlu0 %v943_v36  ;;  %p1522_p4 = pnand %p1521_p3, %p1515_p0 }
 0x5b4   :  { %988 = vperm.xlu1 %1488, %v53_v38  }
 0x630   :  { %v948_v39 = vpop.xlane.xlu1 %947 }
 0x631   :  { %v951_v40 = vmul.f32 0.03125, %v948_v39  ;;  %v945_v41 = vpop.xlane.xlu0 %944 }
 0x632   :  { %v950_v7 = vmul.f32 0.03125, %v945_v41 }
 0x633   :  { %v953_v42 = vsub.f32 %v940_v33, %v951_v40 }
 0x634   :  { %v952_v5 = vsub.f32 %v939_v34, %v950_v7  ;;  %v1815_v16 = vpop.permute.xlu1 %988 }
 0x635   :  { %v955_v43 = vmul.f32 %v953_v42, %v953_v42 }
 0x636   :  { %v954_v45 = vmul.f32 %v952_v5, %v952_v5 }
 0x637   :  { %v959_v44 = vsel %vm66_vm0, %v955_v43, 0.0 }
 0x638   :  { %960 = vadd.xlane.f32.xlu0 %v959_v44  ;;  %v956_v46 = vsel %vm66_vm0, %v954_v45, 0.0 }
 0x63c   :  { %957 = vadd.xlane.f32.xlu0 %v956_v46 }
 0x652   :  { %993 = vperm.xlu0 %1489, %v54_v49  }
 0x6c5   :  { %v961_v63 = vpop.xlane.xlu0 %960 }
 0x6c6   :  { %v963_v0 = vmul.f32 0.03125, %v961_v63 }
 0x6c8   :  { %v965_v1 = vadd.f32 1e-05, %v963_v0 }
 0x6c9   :  { %v958_v2 = vpop.xlane.xlu0 %957 }
 0x6ca   :  { %1506 = vrsqrt.f32 %v965_v1  ;;  %v962_v3 = vmul.f32 0.03125, %v958_v2 }
 0x6cc   :  { %v964_v4 = vadd.f32 1e-05, %v962_v3 }
 0x6ce   :  { %1508 = vrsqrt.f32 %v964_v4 }
 0x6d1   :  { %v1817_v17 = vpop.permute.xlu0 %993 }
 0x6d4   :  { %v1507_v6 = vpop.eup %1506 }
 0x6d5   :  { %v969_v10 = vmul.f32 %v1507_v6, %v953_v42 }
 0x6d7   :  { %v977_v12 = vmul.f32 %v1289_v9, %v969_v10 }
 0x6d8   :  { %v1509_v11 = vpop.eup %1508 }
 0x6d9   :  { %v968_v14 = vmul.f32 %v1509_v11, %v952_v5  ;;  %v985_v8 = vadd.f32 %v1290_v13, %v977_v12 }
 0x6db   :  { %v976_v15 = vmul.f32 %v1289_v9, %v968_v14  ;;  %v997_v20 = vmul.f32 %v1817_v17, %v985_v8 }
 0x6dd   :  { %v984_v18 = vadd.f32 %v1290_v13, %v976_v15 }
 0x6df   :  { %v996_v19 = vmul.f32 %v1815_v16, %v984_v18 }
 0x6e1   :  { %1413 = vmatprep.mubr.msk.f32.mxu1 %vm66_vm0, %v996_v19 }
 0x6e2   :  { %1414 = vmatmul.mubr.msk.f32.vlgmr.msra.gmra.mrb[12].mxu1 %vm66_vm0, %v997_v20 }
 0x7b5   :  { %v1415_v25 = vpop.f32.mrb[12].mxu1 }
 0x7b6   :  { %v1087_v26 = vadd.f32 %v1415_v25, %v1291_v24  ;;  %v1081_v27 = vpop.f32.mrb[13].mxu1 }
 0x7b7   :  { %v1082_v28 = vadd.f32 %v1291_v24, %v1081_v27 }
 0x7b8   :  { %v1091_v30 = vmax.f32 %v1087_v26, 0.0 }
 0x7b9   :  { %v1090_v29 = vmax.f32 %v1082_v28, 0.0 }
 0x7bb   :  { %1432 = vmatprep.mubr.msk.f32.mxu0 %vm1107_vm6, %v1090_v29 }
 0x7bc   :  { %1433 = vmatmul.mubr.msk.f32.vlgmr.msra.gmra.mrb[8].mxu0 %vm1107_vm6, %v1091_v30 }
 0x88f   :  { %v1434_v32 = vpop.f32.mrb[8].mxu0 }
 0x890   :  { %v1186_v33 = vadd.f32 %v1434_v32, %v1294_v31  ;;  %v1180_v34 = vpop.f32.mrb[9].mxu0 }
 0x891   :  { %v1181_v35 = vadd.f32 %v1294_v31, %v1180_v34 }
 0x892   :  { %v1190_v36 = vadd.f32 %v1186_v33, %v997_v20 }
 0x893   :  { %v1189_v37 = vadd.f32 %v1181_v35, %v996_v19 }
 0x894   :  { %v1196_v38 = vsel %vm66_vm0, %v1190_v36, 0.0 }
 0x895   :  { %1197 = vadd.xlane.f32.xlu0 %v1196_v38  ;;  %v1193_v39 = vsel %vm66_vm0, %v1189_v37, 0.0 }
 0x896   :  { %1194 = vadd.xlane.f32.xlu1 %v1193_v39 }
 0x922   :  { %v1198_v40 = vpop.xlane.xlu0 %1197 }
 0x923   :  { %v1200_v41 = vmul.f32 0.03125, %v1198_v40  ;;  %v1195_v7 = vpop.xlane.xlu1 %1194 }
 0x924   :  { %v1199_v42 = vmul.f32 0.03125, %v1195_v7 }
 0x925   :  { %v1202_v5 = vsub.f32 %v1190_v36, %v1200_v41 }
 0x926   :  { %v1201_v43 = vsub.f32 %v1189_v37, %v1199_v42 }
 0x927   :  { %v1204_v46 = vmul.f32 %v1202_v5, %v1202_v5 }
 0x928   :  { %v1203_v44 = vmul.f32 %v1201_v43, %v1201_v43 }
 0x929   :  { %v1208_v47 = vsel %vm66_vm0, %v1204_v46, 0.0 }
 0x92a   :  { %v1205_v45 = vsel %vm66_vm0, %v1203_v44, 0.0 }
 0x92b   :  { %1206 = vadd.xlane.f32.xlu1 %v1205_v45 }
 0x92f   :  { %1209 = vadd.xlane.f32.xlu1 %v1208_v47 }
 0x930   :  { %1525 = shalt.err (!%p1522_p4)
}
 0x931   :  { %s1526_s1 = scalar_lea.hbm %s1894_s15, 512 }
 0x932   :  { %p1527_p5 = scmp.ne.s32.totalorder %s1894_s15, %s1526_s1  ;;  %p1530_p6 = scmp.lt.u32.totalorder %s1526_s1, %s1894_s15 }
 0x934   :  { %p1532_p7 = pnand %p1530_p6, %p1527_p5 }
 0x936   :  { %1535 = shalt.err (!%p1532_p7)
}
 0x937   :  { %s1572_s4 = smov 128   ;;  %s1573_s8 = smov 8   ;;  %v1297_v55 = vld [vmem:[%s1891_s12] ss:$0 sm:$0xff] }
 0x938   :  { %1262 = dma.vmem_to_hbm [thread:$0]  %s1257_s10, 512, %s1894_s15, [#allocation7], %s1572_s4, %s1572_s4, %s1573_s8  }
 0x939   :  { %v1298_v57 = vld [vmem:[%s1892_s13] ss:$0 sm:$0xff]  ;;  %s1574_s15 = smov [#allocation4]  }
 0x93a   :  { %s1244_s3 = sshll.u32 %s1574_s15, 4  ;;  %s1245_s3 = int_to_ptr.vmem [resolvable:$true] %s1244_s3 }
 0x93b   :  { %s1536_s12 = scalar_lea.vmem %s1245_s3, 256  ;;  %p1541_p9 = scmp.lt.s32.totalorder %s1245_s3, %s1245_s3 }
 0x93c   :  { %p1537_p8 = scmp.ne.s32.totalorder %s1245_s3, %s1536_s12  ;;  %p1542_p10 = scmp.lt.s32.totalorder %s1536_s12, %s1536_s12 }
 0x93e   :  { %p1543_p11 = por %p1542_p10, %p1541_p9 }
 0x940   :  { %p1544_p12 = pnand %p1543_p11, %p1537_p8 }
 0x9b8   :  { %v1207_v48 = vpop.xlane.xlu1 %1206 }
 0x9b9   :  { %v1211_v49 = vmul.f32 0.03125, %v1207_v48 }
 0x9bb   :  { %v1213_v50 = vadd.f32 1e-05, %v1211_v49 }
 0x9bc   :  { %v1210_v51 = vpop.xlane.xlu1 %1209 }
 0x9bd   :  { %1510 = vrsqrt.f32 %v1213_v50  ;;  %v1212_v52 = vmul.f32 0.03125, %v1210_v51 }
 0x9bf   :  { %v1214_v53 = vadd.f32 1e-05, %v1212_v52 }
 0x9c1   :  { %1512 = vrsqrt.f32 %v1214_v53 }
 0x9c7   :  { %v1511_v54 = vpop.eup %1510 }
 0x9c8   :  { %v1217_v56 = vmul.f32 %v1511_v54, %v1201_v43 }
 0x9ca   :  { %v1225_v58 = vmul.f32 %v1297_v55, %v1217_v56 }
 0x9cb   :  { %v1513_v59 = vpop.eup %1512 }
 0x9cc   :  { %v1218_v60 = vmul.f32 %v1513_v59, %v1202_v5  ;;  %v1233_v61 = vadd.f32 %v1298_v57, %v1225_v58 }
 0x9ce   :  { %v1226_v62 = vmul.f32 %v1297_v55, %v1218_v60  ;;  %v1235_v63 = vmul.f32 %v1233_v61, %v1815_v16 }
 0x9d0   :  { %v1234_v0 = vadd.f32 %v1298_v57, %v1226_v62  ;;  %1237 = vst.msk [vmem:[#allocation4] sm:$0xff] %vm66_vm0, %v1235_v63 }
 0x9d2   :  { %v1236_v1 = vmul.f32 %v1234_v0, %v1817_v17 }
 0x9d4   :  { %1238 = vst.msk [vmem:[#allocation4 + $0x8] sm:$0xff] %vm66_vm0, %v1236_v1 }
 0x9d5   :  { %1547 = shalt.err (!%p1544_p12)
}
 0x9d6   :  { %s1548_s16 = scalar_lea.hbm %s1893_s14, 256 }
 0x9d7   :  { %p1549_p13 = scmp.ne.s32.totalorder %s1893_s14, %s1548_s16  ;;  %p1552_p0 = scmp.lt.u32.totalorder %s1548_s16, %s1893_s14 }
 0x9d9   :  { %p1554_p1 = pnand %p1552_p0, %p1549_p13 }
 0x9db   :  { %1557 = shalt.err (!%p1554_p1)
}
 0x9dc   :  { %1250 = dma.vmem_to_hbm [thread:$0]  %s1245_s3, 256, %s1893_s14, [#allocation5], %s1572_s4, %s1572_s4, %s1573_s8  }
 0x9dd   :  { %1558 = dma.done.wait [#allocation5], 256  }
 0x9de   :  { %1559 = vsyncadd [#allocation5], 4294967040 }
 0x9df   :  { %1560 = dma.done.wait [#allocation7], 512  }
 0x9e0   :  { %1561 = vsyncadd [#allocation7], 4294966784 }
 0x9e1   :  { %1269 = vsyncpa [#allocation5], 1 }
 0x9e2   :  { %1270 = vsyncpa [#allocation7], 1 }

</bundles_post_ra>
